<compile_context>
chip_gen: v7x
topology: tpu7x:2x2x1
jax: 0.10.0
libtpu: 0.0.40
codegen_flags: <defaults>
</compile_context>

<pallas_src>
import math
import functools

import jax
import jax.numpy as jnp
from jax import lax
from jax.experimental import pallas as pl
from jax.experimental.pallas import tpu as pltpu


# ----------------------------------------------------------------------------
# Parameter / buffer construction (matches the PyTorch __init__ exactly).
# ----------------------------------------------------------------------------
def make_pos_embedding(emb_size: int, maxlen: int = 5000) -> jnp.ndarray:
    den = jnp.exp(-jnp.arange(0, emb_size, 2, dtype=jnp.float32)
                  * math.log(10000.0) / emb_size)                 # (emb_size//2,)
    pos = jnp.arange(0, maxlen, dtype=jnp.float32).reshape(maxlen, 1)
    pe = jnp.zeros((maxlen, emb_size), dtype=jnp.float32)
    pe = pe.at[:, 0::2].set(jnp.sin(pos * den))
    pe = pe.at[:, 1::2].set(jnp.cos(pos * den))
    return pe[:, None, :]                                         # (maxlen, 1, emb_size)


# ----------------------------------------------------------------------------
# Kernels (operate on 2-D lane-dense views: x (TS, B*E), pe (TS, E)).
# ----------------------------------------------------------------------------
def _pe_add_kernel(x_ref, pe_ref, o_ref, *, batch):
    pe = pe_ref[...]                                  # (TS, E) float32
    if batch > 1:
        pe = jnp.tile(pe, (1, batch))                 # (TS, B*E): replicate over batch
    o_ref[...] = (x_ref[...] + pe).astype(o_ref.dtype)


def _pe_add_dropout_kernel(seed_ref, x_ref, pe_ref, o_ref, *, batch, rate, tile_s):
    pe = pe_ref[...]
    if batch > 1:
        pe = jnp.tile(pe, (1, batch))
    y = (x_ref[...] + pe).astype(jnp.float32)

    # Stateless counter-based PRNG: global element index -> 32-bit hash.
    # Works on both Mosaic (TPU) and the interpret path (pure jnp ops).
    shape = y.shape                                   # (TS, B*E)
    width = shape[1]
    rows = lax.broadcasted_iota(jnp.int32, shape, 0) + pl.program_id(0) * tile_s
    cols = lax.broadcasted_iota(jnp.int32, shape, 1)
    idx = (rows * width + cols).astype(jnp.uint32)    # unique element id

    seed_u = seed_ref[0].astype(jnp.uint32)
    x = idx + seed_u * jnp.uint32(0x9E3779B9)
    x = x ^ (x >> 16)
    x = x * jnp.uint32(0x7FEB352D)
    x = x ^ (x >> 15)
    x = x * jnp.uint32(0x846CA68B)
    x = x ^ (x >> 16)                                 # lowbias32 mix -> uniform u32

    # Inverted dropout with an integer threshold: P(keep) = 1 - rate.
    thr = jnp.uint32(min(int(round(rate * 4294967296.0)), 4294967295))
    keep = x >= thr
    scale = 1.0 / (1.0 - rate)
    o_ref[...] = jnp.where(keep, y * scale, 0.0).astype(o_ref.dtype)


# ----------------------------------------------------------------------------
# Wrapper
# ----------------------------------------------------------------------------
def positional_encoding(token_embedding: jnp.ndarray,
                        pos_embedding: jnp.ndarray,
                        dropout_rate: float = 0.1,
                        *,
                        training: bool = False,
                        seed: int = 0,
                        donate_input: bool = False,
                        block_byte_budget: int = 4 * 1024 * 1024) -> jnp.ndarray:
    """token_embedding: (S, B, E); pos_embedding: (maxlen, 1, E) float32."""
    S, B, E = token_embedding.shape
    assert pos_embedding.shape[0] >= S and pos_embedding.shape[2] == E

    # Free layout plumbing: collapse (B, E) onto the lane axis.
    x2d = token_embedding.reshape(S, B * E)           # (S, B*E)
    pe2d = pos_embedding[:S, 0, :]                    # (S, E) float32

    # Byte-budgeted sequence tile, rounded to a sublane multiple of 8.
    itemsize = jnp.dtype(token_embedding.dtype).itemsize
    row_bytes = max(B * E * itemsize, 1)
    ts = max(block_byte_budget // row_bytes, 8)
    ts = max((ts // 8) * 8, 8)
    ts = min(ts, S)                                   # block == full dim if S small
    grid = (pl.cdiv(S, ts),)                          # remainder-safe last block

    x_spec = pl.BlockSpec((ts, B * E), lambda i: (i, 0))
    pe_spec = pl.BlockSpec((ts, E), lambda i: (i, 0))
    out_spec = pl.BlockSpec((ts, B * E), lambda i: (i, 0))
    out_shape = jax.ShapeDtypeStruct((S, B * E), token_embedding.dtype)

    # Double-buffered x-in + out + pe-in, plus slack for internal scratch.
    block_bytes = ts * row_bytes
    pe_bytes = ts * E * 4
    vmem_need = 2 * (2 * block_bytes + pe_bytes) + (2 << 20)
    cparams = pltpu.CompilerParams(
        dimension_semantics=("parallel",),
        vmem_limit_bytes=max(32 * 1024 * 1024, vmem_need))

    if (not training) or dropout_rate == 0.0:
        out2d = pl.pallas_call(
            functools.partial(_pe_add_kernel, batch=B),
            out_shape=out_shape,
            grid=grid,
            in_specs=[x_spec, pe_spec],
            out_specs=out_spec,
            compiler_params=cparams,
            input_output_aliases=({0: 0} if donate_input else {}),
        )(x2d, pe2d)
    else:
        seed_arr = jnp.array([seed], dtype=jnp.int32)
        out2d = pl.pallas_call(
            functools.partial(_pe_add_dropout_kernel, batch=B,
                              rate=float(dropout_rate), tile_s=ts),
            out_shape=out_shape,
            grid=grid,
            in_specs=[pl.BlockSpec(memory_space=pltpu.MemorySpace.SMEM),
                      x_spec, pe_spec],
            out_specs=out_spec,
            compiler_params=cparams,
            input_output_aliases=({1: 0} if donate_input else {}),
        )(seed_arr, x2d, pe2d)

    return out2d.reshape(S, B, E)


# ----------------------------------------------------------------------------
# Demo / self-check
# ----------------------------------------------------------------------------
if __name__ == "__main__":
    emb_size = 32
    maxlen = 64          # small maxlen for the demo (module default is 5000)
    seq_len = 8
    batch = 2
    dropout = 0.1

    key = jax.random.PRNGKey(0)
    token_embedding = jax.random.normal(key, (seq_len, batch, emb_size),
                                        dtype=jnp.float32)
    pos_embedding = make_pos_embedding(emb_size, maxlen)

    # Pure-JAX reference of the (pre-dropout) sum.
    ref = token_embedding + pos_embedding[:seq_len]

    # Eval-mode forward (dropout == identity), matching module.eval().
    out_eval = positional_encoding(token_embedding, pos_embedding, dropout,
                                   training=False)
    out_eval = jax.block_until_ready(out_eval)
    assert out_eval.shape == (seq_len, batch, emb_size)
    assert jnp.allclose(out_eval, ref, atol=1e-6, rtol=1e-6)

    # Train-mode forward: every element is either 0 (dropped) or ref/(1-p).
    out_train = positional_encoding(token_embedding, pos_embedding, dropout,
                                    training=True, seed=1234)
    out_train = jax.block_until_ready(out_train)
    assert out_train.shape == (seq_len, batch, emb_size)
    scaled_ref = ref / (1.0 - dropout)
    ok = jnp.logical_or(jnp.isclose(out_train, 0.0),
                        jnp.isclose(out_train, scaled_ref, atol=1e-5, rtol=1e-5))
    assert bool(jnp.all(ok))

    print("KERNEL_OK")
</pallas_src>

<mosaic_0001>
module attributes {stable_mosaic.version = 11 : i64} {
  func.func @_pe_add_kernel(%arg0: i32, %arg1: memref<8x64xf32, #tpu.memory_space<vmem>>, %arg2: memref<8x32xf32, #tpu.memory_space<vmem>>, %arg3: memref<8x64xf32, #tpu.memory_space<vmem>>) attributes {dimension_semantics = [#tpu.dimension_semantics<parallel>], iteration_bounds = array<i64: 1>, scalar_prefetch = 0 : i64, scratch_operands = 0 : i64, tpu.core_type = #tpu.core_type<tc>, window_params = [{transform_indices = @transform_0, window_bounds = array<i64: 8, 64>}, {transform_indices = @transform_1, window_bounds = array<i64: 8, 32>}, {transform_indices = @transform_2, window_bounds = array<i64: 8, 64>}]} {
    %c0 = arith.constant 0 : index
    %c0_0 = arith.constant 0 : index
    %0 = vector.load %arg2[%c0, %c0_0] : memref<8x32xf32, #tpu.memory_space<vmem>>, vector<8x32xf32>
    %1 = tpu.concatenate %0, %0 in 1 : vector<8x32xf32>, vector<8x32xf32> -> vector<8x64xf32>
    %c0_1 = arith.constant 0 : index
    %c0_2 = arith.constant 0 : index
    %2 = vector.load %arg1[%c0_1, %c0_2] : memref<8x64xf32, #tpu.memory_space<vmem>>, vector<8x64xf32>
    %3 = arith.addf %2, %1 : vector<8x64xf32>
    %c0_3 = arith.constant 0 : index
    %c0_4 = arith.constant 0 : index
    %4 = vector.load %arg3[%c0_3, %c0_4] : memref<8x64xf32, #tpu.memory_space<vmem>>, vector<8x64xf32>
    tpu.vector_store %arg3[%c0_3, %c0_4], %3 {strides = array<i32>} : memref<8x64xf32, #tpu.memory_space<vmem>>, vector<8x64xf32>,
    return
  }
  func.func @transform_0(%arg0: i32) -> (i32, i32) {
    %c0_i32 = arith.constant 0 : i32
    %c0_i32_0 = arith.constant 0 : i32
    return %arg0, %c0_i32 : i32, i32
  }
  func.func @transform_1(%arg0: i32) -> (i32, i32) {
    %c0_i32 = arith.constant 0 : i32
    %c0_i32_0 = arith.constant 0 : i32
    return %arg0, %c0_i32 : i32, i32
  }
  func.func @transform_2(%arg0: i32) -> (i32, i32) {
    %c0_i32 = arith.constant 0 : i32
    %c0_i32_0 = arith.constant 0 : i32
    return %arg0, %c0_i32 : i32, i32
  }
}

</mosaic_0001>

<bundles_post_ra>
// kernel: tpu_custom_call.1
= control target key start
LH: loop header
LB: loop body
LE: loop exit
PB: predicated region body
PF: predicated region fallthrough
CT: control target
= control target key end

     0   :  { %7 = vsyncpa [#allocation3], 0  ;;  %s194_s0 = inlined_call_operand.hbm [shape: f32[8,64], index: 0, kind: input, shape index: {}]   ;;  %s195_s1 = inlined_call_operand.hbm [shape: f32[8,32], index: 1, kind: input, shape index: {}]   ;;  %s196_s2 = inlined_call_operand.hbm [shape: f32[8,64], index: 2, kind: output, shape index: {}]  }
   0x1   :  { %8 = vsyncpa [#allocation6], 0 }
   0x2   :  { %9 = vsyncpa [#allocation4], 0  ;;  %s139_s9 = smov [#allocation2]   ;;  %s140_s11 = smov [#allocation5]  }
   0x3   :  { %s16_s10 = sshll.u32 %s139_s9, 4  ;;  %s26_s12 = sshll.u32 %s140_s11, 4  ;;  %s17_s10 = int_to_ptr.vmem [resolvable:$true] %s16_s10  ;;  %s27_s12 = int_to_ptr.vmem [resolvable:$true] %s26_s12 }
   0x4   :  { %s67_s15 = scalar_lea.hbm %s194_s0, 128 }
   0x5   :  { %p68_p0 = scmp.ne.s32.totalorder %s194_s0, %s67_s15  ;;  %p71_p1 = scmp.lt.u32.totalorder %s67_s15, %s194_s0 }
   0x7   :  { %p73_p2 = pnand %p71_p1, %p68_p0 }
   0x9   :  { %76 = shalt.err (!%p73_p2)
}
   0xa   :  { %s77_s20 = scalar_lea.vmem %s17_s10, 128  ;;  %p82_p4 = scmp.lt.s32.totalorder %s17_s10, %s17_s10 }
   0xb   :  { %p78_p3 = scmp.ne.s32.totalorder %s17_s10, %s77_s20  ;;  %p83_p5 = scmp.lt.s32.totalorder %s77_s20, %s77_s20 }
   0xd   :  { %p84_p6 = por %p83_p5, %p82_p4 }
   0xf   :  { %p85_p7 = pnand %p84_p6, %p78_p3 }
  0x11   :  { %88 = shalt.err (!%p85_p7)
}
  0x12   :  { %19 = dma.hbm_to_vmem [thread:$0]  %s194_s0, 128, %s17_s10, [#allocation3]  }
  0x13   :  { %s89_s25 = scalar_lea.hbm %s195_s1, 128 }
  0x14   :  { %p90_p8 = scmp.ne.s32.totalorder %s195_s1, %s89_s25  ;;  %p93_p9 = scmp.lt.u32.totalorder %s89_s25, %s195_s1 }
  0x16   :  { %p95_p10 = pnand %p93_p9, %p90_p8 }
  0x18   :  { %98 = shalt.err (!%p95_p10)
}
  0x19   :  { %s99_s30 = scalar_lea.vmem %s27_s12, 128  ;;  %p104_p12 = scmp.lt.s32.totalorder %s27_s12, %s27_s12 }
  0x1a   :  { %p100_p11 = scmp.ne.s32.totalorder %s27_s12, %s99_s30  ;;  %p105_p13 = scmp.lt.s32.totalorder %s99_s30, %s99_s30 }
  0x1c   :  { %p106_p0 = por %p105_p13, %p104_p12 }
  0x1e   :  { %p107_p1 = pnand %p106_p0, %p100_p11 }
  0x20   :  { %110 = shalt.err (!%p107_p1)
}
  0x21   :  { %29 = dma.hbm_to_vmem [thread:$0]  %s195_s1, 128, %s27_s12, [#allocation6]  }
  0x22   :  { %133 = dma.done.wait [#allocation3], 128  }
  0x23   :  { %134 = vsyncadd [#allocation3], 4294967168 }
  0x24   :  { %135 = dma.done.wait [#allocation6], 128  }
  0x25   :  { %136 = vsyncadd [#allocation6], 4294967168  ;;  %v36_v0 = vld [vmem:[#allocation5] sm:$0xff]  ;;  %s141_s4 = smov 32   ;;  %vm41_vm0 = vcmask 261120   ;;  %v43_v1 = vld [vmem:[#allocation2] sm:$0xff] }
  0x26   :  { %38 = vrot.lane.b32.xlu0 %v36_v0, %s141_s4  ;;  %s142_s5 = smov [#allocation7]   ;;  %vm45_vm1 = vcmask 523264  }
  0x27   :  { %s53_s6 = sshll.u32 %s142_s5, 4  ;;  %s54_s6 = int_to_ptr.vmem [resolvable:$true] %s53_s6 }
  0x28   :  { %s111_s7 = scalar_lea.vmem %s54_s6, 128  ;;  %p116_p3 = scmp.lt.s32.totalorder %s54_s6, %s54_s6 }
  0x29   :  { %p112_p2 = scmp.ne.s32.totalorder %s54_s6, %s111_s7  ;;  %p117_p4 = scmp.lt.s32.totalorder %s111_s7, %s111_s7 }
  0x2b   :  { %p118_p5 = por %p117_p4, %p116_p3 }
  0x2d   :  { %p119_p6 = pnand %p118_p5, %p112_p2 }
  0x98   :  { %v39_v2 = vpop.permute.xlu0 %38 }
  0x99   :  { %v42_v3 = vsel %vm41_vm0, %v36_v0, %v39_v2 }
  0x9a   :  { %v44_v4 = vadd.f32 %v43_v1, %v42_v3 }
  0x9c   :  { %46 = vst.msk [vmem:[#allocation7] sm:$0xff] %vm45_vm1, %v44_v4 }
  0x9d   :  { %122 = shalt.err (!%p119_p6)
}
  0x9e   :  { %s123_s9 = scalar_lea.hbm %s196_s2, 128 }
  0x9f   :  { %p124_p7 = scmp.ne.s32.totalorder %s196_s2, %s123_s9  ;;  %p127_p8 = scmp.lt.u32.totalorder %s123_s9, %s196_s2 }
  0xa1   :  { %p129_p9 = pnand %p127_p8, %p124_p7 }
  0xa3   :  { %132 = shalt.err (!%p129_p9)
}
  0xa4   :  { %56 = dma.vmem_to_hbm [thread:$0]  %s54_s6, 128, %s196_s2, [#allocation4]  }
  0xa5   :  { %137 = dma.done.wait [#allocation4], 128  }
  0xa6   :  { %138 = vsyncadd [#allocation4], 4294967168 }
  0xa7   :  { %60 = vsyncpa [#allocation3], 1 }
  0xa8   :  { %61 = vsyncpa [#allocation6], 1 }
  0xa9   :  { %62 = vsyncpa [#allocation4], 1 }

</bundles_post_ra>
